<compile_context>
chip_gen: v6e
topology: v6e:2x2x1
jax: 0.10.0
libtpu: 0.0.40
codegen_flags: <defaults>
</compile_context>

<pallas_src>
import jax
import jax.numpy as jnp
from jax.experimental import pallas as pl
from jax.experimental.pallas import tpu as pltpu


_LANE = 128


def _sublane_multiple(dtype) -> int:
    """Native sublane tile height for the dtype (f32:8, bf16:16, int8:32)."""
    itemsize = jnp.dtype(dtype).itemsize
    if itemsize >= 4:
        return 8
    if itemsize == 2:
        return 16
    return 32


def _round_up(x: int, m: int) -> int:
    return ((x + m - 1) // m) * m


def _tpu_memory_profile():
    """(target_block_bytes, vmem_limit_bytes) tuned per TPU generation."""
    try:
        vmem_cap = pltpu.get_tpu_info().vmem_capacity_bytes
    except Exception:
        vmem_cap = 64 * 1024 * 1024  # conservative default (v7x per-TC)
    if vmem_cap >= 100 * 1024 * 1024:
        # v5e / v6e: 128 MiB VMEM -> bigger blocks amortize per-step overhead.
        return 8 * 1024 * 1024, 64 * 1024 * 1024
    # v7x: 64 MiB per-TC VMEM -> keep 4 MiB blocks, leave headroom.
    return 4 * 1024 * 1024, 40 * 1024 * 1024


class Lambda:
    """JAX/Pallas analogue of the PyTorch ``Lambda`` module.

    Applies a pointwise, shape-preserving ``func`` to the input inside a
    Pallas TPU kernel (large lane-dense streaming tiles, memory-bound).
    """

    def __init__(self, func, donate_input: bool = False,
                 small_input_bypass_bytes: int = 1 << 20):
        self.func = func
        self.donate_input = donate_input
        self.small_input_bypass_bytes = small_input_bypass_bytes

    # ------------------------------------------------------------------ kernel
    def _kernel(self, x_ref, o_ref):
        # Hot path: apply the wrapped function to the resident VMEM tile.
        o_ref[...] = self.func(x_ref[...]).astype(o_ref.dtype)

    # --------------------------------------------------------------- internals
    def _run_pallas(self, x2d, out_dtype, in_bytes, out_bytes, exact):
        rows, lanes = x2d.shape
        in_dtype = x2d.dtype
        sub = _sublane_multiple(in_dtype)
        target_block_bytes, vmem_limit = _tpu_memory_profile()
        elem_bytes = max(in_bytes, out_bytes)

        # Largest block that stays within the per-block byte target.
        max_block_rows = max(
            sub, (target_block_bytes // (lanes * elem_bytes)) // sub * sub
        )
        num_blocks = pl.cdiv(rows, max_block_rows)
        # Guarantee >=2 (even) balanced grid steps whenever rows permit so
        # dimension_semantics=("parallel",) shards across both v7x
        # TensorCores and no tiny ragged tail block / load imbalance remains.
        # On single-TC chips the extra step costs ~0.35 us (negligible).
        if rows >= 2 * sub:
            if num_blocks < 2:
                num_blocks = 2
            elif num_blocks % 2:
                num_blocks += 1
        block_rows = min(rows, _round_up(pl.cdiv(rows, num_blocks), sub))
        grid = (pl.cdiv(rows, block_rows),)

        total = rows * lanes
        # TODO(synk): transcendental count of an arbitrary func is unknown;
        # report 0 (the call is memory-bound anyway).
        cost = pl.CostEstimate(
            flops=total,
            transcendentals=0,
            bytes_accessed=total * (in_bytes + out_bytes),
        )

        extra = {}
        # Alias only when the pallas input is an exact reshape of the caller's
        # buffer and dtypes match.  Opt-in: without jit-level donation XLA may
        # insert a copy to satisfy the aliasing, which would cost a pass.
        if self.donate_input and exact and out_dtype == in_dtype:
            extra["input_output_aliases"] = {0: 0}

        return pl.pallas_call(
            self._kernel,
            out_shape=jax.ShapeDtypeStruct((rows, lanes), out_dtype),
            grid=grid,
            in_specs=[pl.BlockSpec((block_rows, lanes), lambda i: (i, 0))],
            out_specs=pl.BlockSpec((block_rows, lanes), lambda i: (i, 0)),
            compiler_params=pltpu.CompilerParams(
                dimension_semantics=("parallel",),
                vmem_limit_bytes=vmem_limit,
            ),
            cost_estimate=cost,
            **extra,
        )(x2d)

    # ------------------------------------------------------------------- call
    def __call__(self, x):
        orig_shape = x.shape
        in_dtype = x.dtype
        total = int(x.size)

        # Output dtype follows whatever the wrapped func returns.
        out_aval = jax.eval_shape(
            self.func, jax.ShapeDtypeStruct(orig_shape, in_dtype)
        )
        out_dtype = out_aval.dtype
        # TODO(synk): only pointwise, shape-preserving funcs are supported;
        # funcs that mix across axes (softmax, cumsum, layernorm, roll) would
        # be silently mis-handled by the ravel/tile strategy.
        assert out_aval.shape == orig_shape, (
            "Lambda Pallas kernel only supports shape-preserving funcs"
        )

        in_bytes = jnp.dtype(in_dtype).itemsize
        out_bytes = jnp.dtype(out_dtype).itemsize

        # Small-input bypass: fixed pallas_call + DMA setup cost (a few us)
        # dwarfs the work for tiny tensors and blocks XLA fusion.
        if total * in_bytes < self.small_input_bypass_bytes:
            return self.func(x)

        # ---- lane-dense 2D view: free reshape when total % 128 == 0 --------
        lanes = None
        for cand in (2048, 1024, 512, 256, 128):
            if total % cand == 0:
                lanes = cand
                break

        if lanes is not None:
            x2d = x.reshape(total // lanes, lanes)
            out2d = self._run_pallas(x2d, out_dtype, in_bytes, out_bytes,
                                     exact=True)
            return out2d.reshape(orig_shape)

        # ---- rare fallback: total not a multiple of 128 ---------------------
        # Run the kernel on the multiple-of-128 prefix and handle the
        # <128-element tail with plain jnp.  Avoids the pad/concat/slice
        # full-array HBM passes and never feeds `func` zero padding.
        lanes = _LANE
        main = (total // lanes) * lanes
        x_flat = x.reshape(-1)
        if main == 0:
            return self.func(x)
        head2d = x_flat[:main].reshape(main // lanes, lanes)
        head_out = self._run_pallas(head2d, out_dtype, in_bytes, out_bytes,
                                    exact=False)
        tail_out = self.func(x_flat[main:]).astype(out_dtype)
        out_flat = jnp.concatenate([head_out.reshape(-1), tail_out])
        return out_flat.reshape(orig_shape)


if __name__ == "__main__":
    key = jax.random.PRNGKey(0)
    # Small NCHW input consistent with typical conv-style usage.
    x = jax.random.normal(key, (2, 4, 16, 16), dtype=jnp.float32)

    func = lambda v: jnp.maximum(v, 0.0)   # representative elementwise func
    y_ref = jnp.maximum(x, 0.0)

    # Force the Pallas path even for this small example (threshold = 0) so the
    # kernel is actually exercised once.
    lam_kernel = Lambda(func, small_input_bypass_bytes=0)
    y = jax.block_until_ready(lam_kernel(x))
    assert y.shape == x.shape and y.dtype == y_ref.dtype
    assert bool(jnp.allclose(y, y_ref)), "mismatch vs reference (pallas path)"

    # Default configuration: small-input bypass path (plain func).
    lam_default = Lambda(func)
    y2 = jax.block_until_ready(lam_default(x))
    assert bool(jnp.allclose(y2, y_ref)), "mismatch vs reference (bypass path)"

    print("KERNEL_OK")
</pallas_src>

<mosaic_0001>
module attributes {stable_mosaic.version = 11 : i64} {
  func.func @_kernel(%arg0: i32, %arg1: memref<1x2048xf32, #tpu.memory_space<vmem>>, %arg2: memref<1x2048xf32, #tpu.memory_space<vmem>>) attributes {dimension_semantics = [#tpu.dimension_semantics<parallel>], iteration_bounds = array<i64: 1>, scalar_prefetch = 0 : i64, scratch_operands = 0 : i64, tpu.core_type = #tpu.core_type<tc>, window_params = [{transform_indices = @transform_0, window_bounds = array<i64: 1, 2048>}, {transform_indices = @transform_1, window_bounds = array<i64: 1, 2048>}]} {
    %c0 = arith.constant 0 : index
    %c0_0 = arith.constant 0 : index
    %0 = vector.load %arg1[%c0, %c0_0] : memref<1x2048xf32, #tpu.memory_space<vmem>>, vector<1x2048xf32>
    %cst = arith.constant 0.000000e+00 : f32
    %1 = vector.broadcast %cst : f32 to vector<1x2048xf32>
    %2 = arith.maximumf %0, %1 : vector<1x2048xf32>
    %c0_1 = arith.constant 0 : index
    %c0_2 = arith.constant 0 : index
    %3 = vector.load %arg2[%c0_1, %c0_2] : memref<1x2048xf32, #tpu.memory_space<vmem>>, vector<1x2048xf32>
    tpu.vector_store %arg2[%c0_1, %c0_2], %2 {strides = array<i32>} : memref<1x2048xf32, #tpu.memory_space<vmem>>, vector<1x2048xf32>,
    return
  }
  func.func @transform_0(%arg0: i32) -> (i32, i32) {
    %c0_i32 = arith.constant 0 : i32
    %c0_i32_0 = arith.constant 0 : i32
    return %arg0, %c0_i32 : i32, i32
  }
  func.func @transform_1(%arg0: i32) -> (i32, i32) {
    %c0_i32 = arith.constant 0 : i32
    %c0_i32_0 = arith.constant 0 : i32
    return %arg0, %c0_i32 : i32, i32
  }
}

</mosaic_0001>

<bundles_post_ra>
// kernel: tpu_custom_call.1
= control target key start
LH: loop header
LB: loop body
LE: loop exit
PB: predicated region body
PF: predicated region fallthrough
CT: control target
= control target key end

     0   :  { %6 = vsyncpa [#allocation3], 0  ;;  %s106_s0 = inlined_call_operand.hbm [shape: f32[1,2048], index: 0, kind: input, shape index: {}]   ;;  %s107_s1 = inlined_call_operand.hbm [shape: f32[1,2048], index: 1, kind: output, shape index: {}]  }
   0x1   :  { %7 = vsyncpa [#allocation4], 0  ;;  %s88_s6 = smov [#allocation2]  }
   0x2   :  { %s14_s7 = sshll.u32 %s88_s6, 4  ;;  %s15_s7 = int_to_ptr.vmem [resolvable:$true] %s14_s7 }
   0x3   :  { %s52_s8 = scalar_lea.vmem %s15_s7, 256  ;;  %p57_p1 = scmp.lt.s32.totalorder %s15_s7, %s15_s7 }
   0x4   :  { %p53_p0 = scmp.ne.s32.totalorder %s15_s7, %s52_s8  ;;  %p58_p2 = scmp.lt.s32.totalorder %s52_s8, %s52_s8 }
   0x6   :  { %p59_p3 = por %p58_p2, %p57_p1 }
   0x8   :  { %p60_p4 = pnand %p59_p3, %p53_p0 }
   0xa   :  { %63 = shalt.err (!%p60_p4)
}
   0xb   :  { %17 = dma.hbm_to_vmem [thread:$0]  %s106_s0, 256, %s15_s7, [#allocation3]  }
   0xc   :  { %84 = dma.done.wait [#allocation3], 256  }
   0xd   :  { %85 = vsyncadd [#allocation3], 4294967040  ;;  %s89_s11 = smov [#allocation5]   ;;  %v21_v0 = vld [vmem:[#allocation2] sm:$0xff]  ;;  %v22_v1 = vld [vmem:[#allocation2 + $0x8] sm:$0xff] }
   0xe   :  { %s33_s12 = sshll.u32 %s89_s11, 4  ;;  %v23_v2 = vmax.f32 %v21_v0, 0.0  ;;  %v24_v3 = vmax.f32 %v22_v1, 0.0  ;;  %s34_s12 = int_to_ptr.vmem [resolvable:$true] %s33_s12 }
   0xf   :  { %s64_s13 = scalar_lea.vmem %s34_s12, 256  ;;  %p69_p6 = scmp.lt.s32.totalorder %s34_s12, %s34_s12 }
  0x10   :  { %25 = vst [vmem:[#allocation5] sm:$0xff] %v23_v2  ;;  %26 = vst [vmem:[#allocation5 + $0x8] sm:$0xff] %v24_v3  ;;  %p65_p5 = scmp.ne.s32.totalorder %s34_s12, %s64_s13  ;;  %p70_p7 = scmp.lt.s32.totalorder %s64_s13, %s64_s13 }
  0x12   :  { %p71_p8 = por %p70_p7, %p69_p6 }
  0x14   :  { %p72_p9 = pnand %p71_p8, %p65_p5 }
  0x16   :  { %75 = shalt.err (!%p72_p9)
}
  0x17   :  { %36 = dma.vmem_to_hbm [thread:$0]  %s34_s12, 256, %s107_s1, [#allocation4]  }
  0x18   :  { %86 = dma.done.wait [#allocation4], 256  }
  0x19   :  { %87 = vsyncadd [#allocation4], 4294967040 }
  0x1a   :  { %40 = vsyncpa [#allocation3], 1 }
  0x1b   :  { %41 = vsyncpa [#allocation4], 1 }

</bundles_post_ra>
